<compile_context>
chip_gen: v7x
topology: tpu7x:2x2x1
jax: 0.10.0
libtpu: 0.0.40
codegen_flags: <defaults>
</compile_context>

<pallas_src>
import math

import jax
import jax.numpy as jnp
from jax import lax
from jax.experimental import pallas as pl
from jax.experimental.pallas import tpu as pltpu


def _round_up(v, m):
    return (v + m - 1) // m * m


def _pad2(a, rows, cols, value=0):
    return jnp.pad(a, ((0, rows - a.shape[0]), (0, cols - a.shape[1])),
                   constant_values=value)


def _vmem_capacity_bytes():
    """Per-core VMEM capacity (128 MiB on v5e/v6e, 64 MiB per TC on v7x)."""
    try:
        return int(pltpu.get_tpu_info().vmem_capacity_bytes)
    except Exception:
        return 64 << 20  # conservative default (v7x per-TensorCore)


def _masked_layernorm(z, gamma, beta, c_valid):
    """LayerNorm over the first `c_valid` lanes of z; padded lanes are zeroed."""
    lane = lax.broadcasted_iota(jnp.int32, z.shape, 1)
    mask = lane < c_valid
    inv_n = 1.0 / c_valid
    mean = jnp.sum(jnp.where(mask, z, 0.0), axis=-1, keepdims=True) * inv_n
    d = jnp.where(mask, z - mean, 0.0)
    var = jnp.sum(d * d, axis=-1, keepdims=True) * inv_n
    out = d * lax.rsqrt(var + 1e-5) * gamma + beta          # EUP rsqrt
    return jnp.where(mask, out, 0.0)


def _invariant_spec(block_shape, index_map, single_buffer):
    """BlockSpec for a grid-invariant block; single-buffer it to halve VMEM use."""
    if single_buffer:
        return pl.BlockSpec(block_shape, index_map, pipeline_mode=pl.Buffered(1))
    return pl.BlockSpec(block_shape, index_map)


# ---------------------------------------------------------------------------
# Gather path: O(N*K*C_in) neighbor sum; x resident in VMEM, edge table in SMEM.
# ---------------------------------------------------------------------------
def _gin_conv_gather(x, edge_index, weight, bias, gamma, beta, eps, *, tm, vmem_cap):
    n, c_in = x.shape
    c_out = weight.shape[1]
    k_deg = edge_index.shape[1]
    c_in_p = _round_up(c_in, 128)
    c_out_p = _round_up(c_out, 128)

    tm = max(8, _round_up(int(tm), 8))
    n_p = _round_up(n, tm)                        # padded output rows
    n_rows = n_p if n_p > n else n_p + 8          # x rows incl. >= 1 guaranteed zero row

    x_p = _pad2(x.astype(jnp.float32), n_rows, c_in_p)
    w_p = _pad2(weight.astype(jnp.float32), c_in_p, c_out_p).astype(jnp.bfloat16)
    b_p = _pad2(bias.reshape(1, -1).astype(jnp.float32), 1, c_out_p)
    g_p = _pad2(gamma.reshape(1, -1).astype(jnp.float32), 1, c_out_p)
    bt_p = _pad2(beta.reshape(1, -1).astype(jnp.float32), 1, c_out_p)
    eps_a = jnp.asarray(eps, jnp.float32).reshape(1, 1)

    # Flattened neighbor table for SMEM scalar prefetch.  Any "no neighbor" id (-1 or N,
    # or anything out of range) is remapped to the zero row `n`.
    # TODO(synk): ids < -1 would wrap to real rows under PyTorch negative indexing; here
    # every out-of-range id means "no neighbor" (documented contract).
    e_p = _pad2(edge_index.astype(jnp.int32), n_p, k_deg, value=-1)
    e_flat = jnp.where((e_p < 0) | (e_p >= n), jnp.int32(n), e_p).reshape(-1)

    grid = (n_p // tm,)

    def kernel(edge_ref, eps_ref, x_ref, w_ref, b_ref, g_ref, bt_ref,
               out_ref, neigh_ref):
        i = pl.program_id(0)
        row0 = pl.multiple_of(i * tm, 8)

        # Neighbor sum: gather-accumulate the K neighbor rows of VMEM-resident x.
        def row_body(r, carry):
            base = (row0 + r) * k_deg
            acc = x_ref[pl.ds(edge_ref[base], 1), :].astype(jnp.float32)
            for kk in range(1, k_deg):
                acc = acc + x_ref[pl.ds(edge_ref[base + kk], 1), :].astype(jnp.float32)
            neigh_ref[pl.ds(r, 1), :] = acc
            return carry

        lax.fori_loop(0, tm, row_body, 0)

        # Fused (1+eps)*x + neigh -> Linear (bf16 MXU, f32 acc) -> masked LayerNorm.
        one_eps = 1.0 + eps_ref[0, 0]
        h = one_eps * x_ref[pl.ds(row0, tm), :].astype(jnp.float32) + neigh_ref[...]
        z = jnp.dot(h.astype(jnp.bfloat16), w_ref[...],
                    preferred_element_type=jnp.float32) + b_ref[...]
        out_ref[...] = _masked_layernorm(z, g_ref[...], bt_ref[...],
                                         c_out).astype(out_ref.dtype)

    flops = int(n_p * k_deg * c_in_p + 2 * n_p * c_in_p * c_out_p + 8 * n_p * c_out_p)
    bytes_accessed = int(4 * (n_rows * c_in_p + n_p * c_out_p + n_p * k_deg)
                         + 2 * c_in_p * c_out_p)
    vmem_bytes = (4 * n_rows * c_in_p            # x (resident, single-buffered)
                  + 2 * c_in_p * c_out_p         # W (bf16, single-buffered)
                  + 3 * 8 * c_out_p * 4          # bias / gamma / beta
                  + 2 * tm * c_out_p * 4         # output tile (double-buffered)
                  + tm * c_in_p * 4)             # neighbor-sum scratch
    vmem_limit = int(min(0.9 * vmem_cap, max(vmem_bytes + (4 << 20), 16 << 20)))

    def build(single_buffer):
        grid_spec = pltpu.PrefetchScalarGridSpec(
            num_scalar_prefetch=1,
            grid=grid,
            in_specs=[
                pl.BlockSpec(memory_space=pltpu.MemorySpace.SMEM),               # eps
                _invariant_spec((n_rows, c_in_p), lambda i, e: (0, 0), single_buffer),
                _invariant_spec((c_in_p, c_out_p), lambda i, e: (0, 0), single_buffer),
                _invariant_spec((1, c_out_p), lambda i, e: (0, 0), single_buffer),
                _invariant_spec((1, c_out_p), lambda i, e: (0, 0), single_buffer),
                _invariant_spec((1, c_out_p), lambda i, e: (0, 0), single_buffer),
            ],
            out_specs=pl.BlockSpec((tm, c_out_p), lambda i, e: (i, 0)),
            scratch_shapes=[pltpu.VMEM((tm, c_in_p), jnp.float32)],
        )
        return pl.pallas_call(
            kernel,
            out_shape=jax.ShapeDtypeStruct((n_p, c_out_p), x.dtype),
            grid_spec=grid_spec,
            compiler_params=pltpu.CompilerParams(
                dimension_semantics=("parallel",),
                vmem_limit_bytes=vmem_limit),
            cost_estimate=pl.CostEstimate(flops=flops, transcendentals=int(n_p),
                                          bytes_accessed=bytes_accessed),
        )

    args = (e_flat, eps_a, x_p, w_p, b_p, g_p, bt_p)
    try:
        out_p = build(True)(*args)
    except Exception:
        # Runtime without pl.Buffered(1) support: fall back to default double-buffering.
        out_p = build(False)(*args)

    return out_p[:n, :c_out]


# ---------------------------------------------------------------------------
# Dense-adjacency fallback: tiled A @ x on the MXU (2-D grid, VMEM accumulator).
# ---------------------------------------------------------------------------
def _gin_conv_dense(x, edge_index, weight, bias, gamma, beta, eps, *, tm, tn, vmem_cap):
    n, c_in = x.shape
    c_out = weight.shape[1]
    k_deg = edge_index.shape[1]
    c_in_p = _round_up(c_in, 128)
    c_out_p = _round_up(c_out, 128)

    tm = max(8, _round_up(int(tm), 8))
    tn = max(tm, _round_up(int(tn), tm))          # reduction tile: multiple of tm
    n_p = _round_up(n, tn)                        # bounded padding (< tn extra rows)
    stripe = 128 if tn % 128 == 0 else tn         # one-hot build stripe (lane width)
    a_dtype = jnp.bfloat16 if k_deg <= 256 else jnp.float32   # counts exact in bf16

    x_p = _pad2(x.astype(jnp.float32), n_p, c_in_p)
    e_p = _pad2(edge_index.astype(jnp.int32), n_p, k_deg, value=-1)
    w_p = _pad2(weight.astype(jnp.float32), c_in_p, c_out_p).astype(jnp.bfloat16)
    b_p = _pad2(bias.reshape(1, -1).astype(jnp.float32), 1, c_out_p)
    g_p = _pad2(gamma.reshape(1, -1).astype(jnp.float32), 1, c_out_p)
    bt_p = _pad2(beta.reshape(1, -1).astype(jnp.float32), 1, c_out_p)
    eps_a = jnp.asarray(eps, jnp.float32).reshape(1, 1)

    grid = (n_p // tm, n_p // tn)

    def kernel(eps_ref, edge_ref, xs_ref, xq_ref, w_ref, b_ref, g_ref, bt_ref,
               out_ref, acc_ref):
        j = pl.program_id(1)
        nj = pl.num_programs(1)

        @pl.when(j == 0)
        def _init():
            # Start the accumulator from the (1+eps)*x self term (lighter finalize).
            acc_ref[...] = (1.0 + eps_ref[0, 0]) * xq_ref[...].astype(jnp.float32)

        # Shift the (tiny) edge ids instead of the [tm, stripe] iota; build the one-hot
        # adjacency stripe-wise in int32 (exact, low vreg pressure) and cast once for
        # the MXU.  Ids outside this column tile (incl. -1 / N "no neighbor") never
        # match, so they contribute nothing.
        # TODO(synk): ids < -1 would wrap to real rows under PyTorch negative indexing;
        # here every out-of-range id means "no neighbor" (documented contract).
        ei = edge_ref[...].astype(jnp.int32) - j * tn                 # [tm, K]
        col = lax.broadcasted_iota(jnp.int32, (tm, stripe), 1)        # j-invariant

        for s0 in range(0, tn, stripe):
            cnt = (ei[:, 0:1] - s0 == col).astype(jnp.int32)
            for kk in range(1, k_deg):
                cnt = cnt + (ei[:, kk:kk + 1] - s0 == col).astype(jnp.int32)
            acc_ref[...] += jnp.dot(
                cnt.astype(a_dtype), xs_ref[pl.ds(s0, stripe), :].astype(a_dtype),
                preferred_element_type=jnp.float32)

        @pl.when(j == nj - 1)
        def _finalize():
            z = jnp.dot(acc_ref[...].astype(jnp.bfloat16), w_ref[...],
                        preferred_element_type=jnp.float32) + b_ref[...]
            out_ref[...] = _masked_layernorm(z, g_ref[...], bt_ref[...],
                                             c_out).astype(out_ref.dtype)

    flops = int(2 * n_p * n_p * c_in_p + n_p * n_p * k_deg
                + 2 * n_p * c_in_p * c_out_p)
    bytes_accessed = int(4 * ((n_p // tm) * n_p * c_in_p + n_p * c_in_p
                              + n_p * k_deg + n_p * c_out_p)
                         + 2 * c_in_p * c_out_p)
    vmem_bytes = (2 * tn * c_in_p * 4            # x sources (double-buffered)
                  + 2 * tm * c_in_p * 4          # x self rows (double-buffered)
                  + 2 * tm * 128 * 4             # edge tile (lane-padded)
                  + c_in_p * c_out_p * 2         # W (bf16, single-buffered)
                  + 3 * 8 * c_out_p * 4          # bias / gamma / beta
                  + 2 * tm * c_out_p * 4         # output tile
                  + tm * c_in_p * 4)             # accumulator scratch
    vmem_limit = int(min(0.9 * vmem_cap, max(2 * vmem_bytes, 16 << 20)))

    def build(single_buffer):
        in_specs = [
            pl.BlockSpec(memory_space=pltpu.MemorySpace.SMEM),             # eps
            pl.BlockSpec((tm, k_deg), lambda i, j: (i, 0)),                # edge ids
            pl.BlockSpec((tn, c_in_p), lambda i, j: (j, 0)),               # x (sources)
            pl.BlockSpec((tm, c_in_p), lambda i, j: (i, 0)),               # x (self)
            _invariant_spec((c_in_p, c_out_p), lambda i, j: (0, 0), single_buffer),
            _invariant_spec((1, c_out_p), lambda i, j: (0, 0), single_buffer),
            _invariant_spec((1, c_out_p), lambda i, j: (0, 0), single_buffer),
            _invariant_spec((1, c_out_p), lambda i, j: (0, 0), single_buffer),
        ]
        return pl.pallas_call(
            kernel,
            out_shape=jax.ShapeDtypeStruct((n_p, c_out_p), x.dtype),
            grid=grid,
            in_specs=in_specs,
            out_specs=pl.BlockSpec((tm, c_out_p), lambda i, j: (i, 0)),
            scratch_shapes=[pltpu.VMEM((tm, c_in_p), jnp.float32)],
            compiler_params=pltpu.CompilerParams(
                dimension_semantics=("parallel", "arbitrary"),
                vmem_limit_bytes=vmem_limit),
            cost_estimate=pl.CostEstimate(flops=flops, transcendentals=int(n_p),
                                          bytes_accessed=bytes_accessed),
        )

    args = (eps_a, e_p, x_p, x_p, w_p, b_p, g_p, bt_p)
    try:
        out_p = build(True)(*args)
    except Exception:
        out_p = build(False)(*args)

    return out_p[:n, :c_out]


# ---------------------------------------------------------------------------
# Public entry point: picks the path from graph size vs on-chip memory budgets.
# ---------------------------------------------------------------------------
def gin_conv(x, edge_index, weight, bias, gamma, beta, eps, *,
             method="auto", tm=None, tn=None):
    """GINConv forward.  `weight` is stored [C_in, C_out] (transpose of nn.Linear).

    edge_index is [N, K] with neighbor row ids; -1 or N mean "no neighbor" and
    contribute the zero row, matching the PyTorch zero-padding trick.
    """
    n, c_in = x.shape
    c_out = weight.shape[1]
    if edge_index.shape[1] == 0:                   # degenerate: no neighbors at all
        edge_index = jnp.full((n, 1), -1, dtype=jnp.int32)
    k_deg = edge_index.shape[1]

    c_in_p = _round_up(c_in, 128)
    c_out_p = _round_up(c_out, 128)
    vmem_cap = _vmem_capacity_bytes()

    # Row tile: the only "parallel" grid axis -> keep >= 2 tiles when possible so both
    # of v7x's TensorCores get work; larger tiles amortize the ~0.35us/step overhead.
    if tm is None:
        tm = min(128, _round_up(max((n + 1) // 2, 8), 8))
    tm = max(8, _round_up(int(tm), 8))

    if method == "auto":
        n_p = _round_up(n, tm)
        n_rows = n_p + 8 if n_p == n else n_p
        gather_vmem = (4 * n_rows * c_in_p + 2 * c_in_p * c_out_p
                       + 2 * tm * c_out_p * 4 + tm * c_in_p * 4)
        gather_smem = 4 * n_p * k_deg
        # Sparse gather path (O(N*K*C_in)) whenever x fits in VMEM and the edge table
        # fits in SMEM; otherwise the tiled dense-adjacency MXU path.
        method = ("gather"
                  if gather_vmem <= int(0.7 * vmem_cap) and gather_smem <= (256 << 10)
                  else "dense")
        # TODO(synk): very large graphs (x >> VMEM) with tiny K would be better served
        # by a manual HBM row-gather DMA pipeline than by the dense fallback.

    if method == "gather":
        return _gin_conv_gather(x, edge_index, weight, bias, gamma, beta, eps,
                                tm=tm, vmem_cap=vmem_cap)

    if tn is None:
        tn_target = 1024 if vmem_cap >= (96 << 20) else 512   # v5e/v6e can afford more
        tn = min(tn_target, _round_up(n, tm))
    return _gin_conv_dense(x, edge_index, weight, bias, gamma, beta, eps,
                           tm=tm, tn=int(tn), vmem_cap=vmem_cap)


def gin_conv_reference(x, edge_index, w, b, gamma, beta, eps):
    """Pure-JAX reference mirroring the PyTorch module."""
    n, c_in = x.shape
    x_pad = jnp.concatenate([x, jnp.zeros((1, c_in), x.dtype)], axis=0)
    idx = jnp.where(edge_index < 0, n, edge_index)     # -1 -> appended zero row
    neigh = x_pad[idx]                                 # [N, K, C_in]
    h = (1.0 + eps) * x + neigh.sum(axis=1)
    z = h @ w + b
    mean = jnp.mean(z, axis=-1, keepdims=True)
    var = jnp.mean((z - mean) ** 2, axis=-1, keepdims=True)
    return (z - mean) * lax.rsqrt(var + 1e-5) * gamma + beta


if __name__ == "__main__":
    key = jax.random.PRNGKey(0)
    k_x, k_w, k_b, k_g, k_bt, k_e, k_p, k_q = jax.random.split(key, 8)

    N, K, C_IN, C_OUT = 24, 4, 32, 48
    EPS = 0.05                                   # trainable eps (any scalar value)

    x = jax.random.normal(k_x, (N, C_IN), dtype=jnp.float32)

    # nn.Linear(in, out, bias=True) default init: U(-1/sqrt(in), 1/sqrt(in));
    # weight stored transposed as [C_in, C_out].
    bound = 1.0 / math.sqrt(C_IN)
    w = jax.random.uniform(k_w, (C_IN, C_OUT), minval=-bound, maxval=bound,
                           dtype=jnp.float32)
    b = jax.random.uniform(k_b, (C_OUT,), minval=-bound, maxval=bound,
                           dtype=jnp.float32)
    gamma = 1.0 + 0.1 * jax.random.normal(k_g, (C_OUT,), dtype=jnp.float32)
    beta = 0.1 * jax.random.normal(k_bt, (C_OUT,), dtype=jnp.float32)

    # Random neighbor lists, padded with both -1 and N (both map to the zero row).
    ei = jax.random.randint(k_e, (N, K), 0, N, dtype=jnp.int32)
    ei = jnp.where(jax.random.uniform(k_p, (N, K)) < 0.25, jnp.int32(-1), ei)
    edge_index = jnp.where(jax.random.uniform(k_q, (N, K)) < 0.15, jnp.int32(N), ei)

    ref = gin_conv_reference(x, edge_index, w, b, gamma, beta, EPS)

    # Auto path (gather at this size) plus small explicit tiles so both kernels run
    # real multi-tile grids (fori gather loop, pl.when init/finalize, stripe build).
    out_auto = gin_conv(x, edge_index, w, b, gamma, beta, EPS)
    out_gather = gin_conv(x, edge_index, w, b, gamma, beta, EPS,
                          method="gather", tm=8)
    out_dense = gin_conv(x, edge_index, w, b, gamma, beta, EPS,
                         method="dense", tm=8, tn=16)
    jax.block_until_ready((out_auto, out_gather, out_dense))

    for out in (out_auto, out_gather, out_dense):
        assert out.shape == (N, C_OUT) and out.dtype == jnp.float32
        assert jnp.allclose(out, ref, atol=3e-2, rtol=3e-2), (
            float(jnp.max(jnp.abs(out - ref))))

    print("KERNEL_OK")
</pallas_src>

<mosaic_0001>
module attributes {stable_mosaic.version = 11 : i64} {
  func.func @kernel(%arg0: i32, %arg1: memref<128xi32, #tpu.memory_space<smem>>, %arg2: memref<1x1xf32, #tpu.memory_space<smem>>, %arg3: memref<32x128xf32, #tpu.memory_space<vmem>>, %arg4: memref<128x128xbf16, #tpu.memory_space<vmem>>, %arg5: memref<1x128xf32, #tpu.memory_space<vmem>>, %arg6: memref<1x128xf32, #tpu.memory_space<vmem>>, %arg7: memref<1x128xf32, #tpu.memory_space<vmem>>, %arg8: memref<16x128xf32, #tpu.memory_space<vmem>>, %arg9: memref<16x128xf32, #tpu.memory_space<vmem>>) attributes {dimension_semantics = [#tpu.dimension_semantics<parallel>], iteration_bounds = array<i64: 2>, scalar_prefetch = 1 : i64, scratch_operands = 1 : i64, tpu.core_type = #tpu.core_type<tc>, window_params = [{transform_indices = @transform_0, window_bounds = array<i64: 1, 1>}, {pipeline_mode = #tpu.pipeline_mode<synchronous>, transform_indices = @transform_1, window_bounds = array<i64: 32, 128>}, {pipeline_mode = #tpu.pipeline_mode<synchronous>, transform_indices = @transform_2, window_bounds = array<i64: 128, 128>}, {pipeline_mode = #tpu.pipeline_mode<synchronous>, transform_indices = @transform_3, window_bounds = array<i64: 1, 128>}, {pipeline_mode = #tpu.pipeline_mode<synchronous>, transform_indices = @transform_4, window_bounds = array<i64: 1, 128>}, {pipeline_mode = #tpu.pipeline_mode<synchronous>, transform_indices = @transform_5, window_bounds = array<i64: 1, 128>}, {transform_indices = @transform_6, window_bounds = array<i64: 16, 128>}]} {
    %c16_i32 = arith.constant 16 : i32
    %0 = arith.muli %arg0, %c16_i32 : i32
    %1 = tpu.assume_multiple %0, 8 : i32
    %c0_i32 = arith.constant 0 : i32
    %c16_i32_0 = arith.constant 16 : i32
    %2 = arith.addi %c0_i32, %c16_i32_0 : i32
    %c1_i32 = arith.constant 1 : i32
    scf.for %arg10 = %c0_i32 to %2 step %c1_i32  : i32 {
      %49 = arith.addi %1, %arg10 : i32
      %c4_i32 = arith.constant 4 : i32
      %50 = arith.muli %49, %c4_i32 : i32
      %51 = arith.index_cast %50 : i32 to index
      %52 = memref.load %arg1[%51] : memref<128xi32, #tpu.memory_space<smem>>
      %53 = arith.index_cast %52 : i32 to index
      %c0_25 = arith.constant 0 : index
      %54 = vector.load %arg3[%53, %c0_25] : memref<32x128xf32, #tpu.memory_space<vmem>>, vector<1x128xf32>
      %c1_i32_26 = arith.constant 1 : i32
      %55 = arith.addi %50, %c1_i32_26 : i32
      %56 = arith.index_cast %55 : i32 to index
      %57 = memref.load %arg1[%56] : memref<128xi32, #tpu.memory_space<smem>>
      %58 = arith.index_cast %57 : i32 to index
      %c0_27 = arith.constant 0 : index
      %59 = vector.load %arg3[%58, %c0_27] : memref<32x128xf32, #tpu.memory_space<vmem>>, vector<1x128xf32>
      %60 = arith.addf %54, %59 : vector<1x128xf32>
      %c2_i32 = arith.constant 2 : i32
      %61 = arith.addi %50, %c2_i32 : i32
      %62 = arith.index_cast %61 : i32 to index
      %63 = memref.load %arg1[%62] : memref<128xi32, #tpu.memory_space<smem>>
      %64 = arith.index_cast %63 : i32 to index
      %c0_28 = arith.constant 0 : index
      %65 = vector.load %arg3[%64, %c0_28] : memref<32x128xf32, #tpu.memory_space<vmem>>, vector<1x128xf32>
      %66 = arith.addf %60, %65 : vector<1x128xf32>
      %c3_i32 = arith.constant 3 : i32
      %67 = arith.addi %50, %c3_i32 : i32
      %68 = arith.index_cast %67 : i32 to index
      %69 = memref.load %arg1[%68] : memref<128xi32, #tpu.memory_space<smem>>
      %70 = arith.index_cast %69 : i32 to index
      %c0_29 = arith.constant 0 : index
      %71 = vector.load %arg3[%70, %c0_29] : memref<32x128xf32, #tpu.memory_space<vmem>>, vector<1x128xf32>
      %72 = arith.addf %66, %71 : vector<1x128xf32>
      %73 = arith.index_cast %arg10 : i32 to index
      %c0_30 = arith.constant 0 : index
      %74 = vector.load %arg9[%73, %c0_30] : memref<16x128xf32, #tpu.memory_space<vmem>>, vector<1x128xf32>
      tpu.vector_store %arg9[%73, %c0_30], %72 {strides = array<i32>} : memref<16x128xf32, #tpu.memory_space<vmem>>, vector<1x128xf32>,
    }
    %c16_i32_1 = arith.constant 16 : i32
    %c0 = arith.constant 0 : index
    %c0_2 = arith.constant 0 : index
    %3 = memref.load %arg2[%c0, %c0_2] : memref<1x1xf32, #tpu.memory_space<smem>>
    %cst = arith.constant 1.000000e+00 : f32
    %4 = arith.addf %cst, %3 : f32
    %5 = arith.index_cast %1 : i32 to index
    %c0_3 = arith.constant 0 : index
    %6 = vector.load %arg3[%5, %c0_3] : memref<32x128xf32, #tpu.memory_space<vmem>>, vector<16x128xf32>
    %7 = vector.broadcast %4 : f32 to vector<16x128xf32>
    %8 = arith.mulf %7, %6 : vector<16x128xf32>
    %c0_4 = arith.constant 0 : index
    %c0_5 = arith.constant 0 : index
    %9 = vector.load %arg9[%c0_4, %c0_5] : memref<16x128xf32, #tpu.memory_space<vmem>>, vector<16x128xf32>
    %10 = arith.addf %8, %9 : vector<16x128xf32>
    %11 = arith.truncf %10 : vector<16x128xf32> to vector<16x128xbf16>
    %c0_6 = arith.constant 0 : index
    %c0_7 = arith.constant 0 : index
    %12 = vector.load %arg4[%c0_6, %c0_7] : memref<128x128xbf16, #tpu.memory_space<vmem>>, vector<128x128xbf16>
    %cst_8 = arith.constant dense<0.000000e+00> : vector<16x128xf32>
    %13 = tpu.matmul %11, %12, %cst_8 {dimension_numbers = #tpu.dot_dimension_numbers<[1], [0], [0], [1], [0, 0, 1, 1], [], []>} : vector<16x128xbf16>, vector<128x128xbf16>, vector<16x128xf32> -> vector<16x128xf32>
    %c0_9 = arith.constant 0 : index
    %c0_10 = arith.constant 0 : index
    %14 = vector.load %arg5[%c0_9, %c0_10] : memref<1x128xf32, #tpu.memory_space<vmem>>, vector<1x128xf32>
    %15 = vector.broadcast %14 : vector<1x128xf32> to vector<16x128xf32>
    %16 = arith.addf %13, %15 : vector<16x128xf32>
    %c0_11 = arith.constant 0 : index
    %c0_12 = arith.constant 0 : index
    %17 = vector.load %arg6[%c0_11, %c0_12] : memref<1x128xf32, #tpu.memory_space<vmem>>, vector<1x128xf32>
    %c0_13 = arith.constant 0 : index
    %c0_14 = arith.constant 0 : index
    %18 = vector.load %arg7[%c0_13, %c0_14] : memref<1x128xf32, #tpu.memory_space<vmem>>, vector<1x128xf32>
    %19 = tpu.iota {dimensions = array<i32: 1>} : vector<16x128xi32>
    %c48_i32 = arith.constant 48 : i32
    %20 = vector.broadcast %c48_i32 : i32 to vector<16x128xi32>
    %21 = arith.cmpi slt, %19, %20 : vector<16x128xi32>
    %cst_15 = arith.constant 0.000000e+00 : f32
    %22 = vector.broadcast %cst_15 : f32 to vector<16x128xf32>
    %23 = arith.select %21, %16, %22 : vector<16x128xi1>, vector<16x128xf32>
    %cst_16 = arith.constant dense<0.000000e+00> : vector<16xf32>
    %24 = vector.multi_reduction <add>, %23, %cst_16 [1] : vector<16x128xf32> to vector<16xf32>
    %25 = vector.shape_cast %24 : vector<16xf32> to vector<16x1xf32>
    %cst_17 = arith.constant 0.020833334 : f32
    %26 = vector.broadcast %cst_17 : f32 to vector<16x1xf32>
    %27 = arith.mulf %25, %26 : vector<16x1xf32>
    %28 = vector.broadcast %27 : vector<16x1xf32> to vector<16x128xf32>
    %29 = arith.subf %16, %28 : vector<16x128xf32>
    %cst_18 = arith.constant 0.000000e+00 : f32
    %30 = vector.broadcast %cst_18 : f32 to vector<16x128xf32>
    %31 = arith.select %21, %29, %30 : vector<16x128xi1>, vector<16x128xf32>
    %32 = arith.mulf %31, %31 : vector<16x128xf32>
    %cst_19 = arith.constant dense<0.000000e+00> : vector<16xf32>
    %33 = vector.multi_reduction <add>, %32, %cst_19 [1] : vector<16x128xf32> to vector<16xf32>
    %34 = vector.shape_cast %33 : vector<16xf32> to vector<16x1xf32>
    %cst_20 = arith.constant 0.020833334 : f32
    %35 = vector.broadcast %cst_20 : f32 to vector<16x1xf32>
    %36 = arith.mulf %34, %35 : vector<16x1xf32>
    %cst_21 = arith.constant 9.99999974E-6 : f32
    %37 = vector.broadcast %cst_21 : f32 to vector<16x1xf32>
    %38 = arith.addf %36, %37 : vector<16x1xf32>
    %39 = math.rsqrt %38 : vector<16x1xf32>
    %40 = vector.broadcast %39 : vector<16x1xf32> to vector<16x128xf32>
    %41 = arith.mulf %31, %40 : vector<16x128xf32>
    %42 = vector.broadcast %17 : vector<1x128xf32> to vector<16x128xf32>
    %43 = arith.mulf %41, %42 : vector<16x128xf32>
    %44 = vector.broadcast %18 : vector<1x128xf32> to vector<16x128xf32>
    %45 = arith.addf %43, %44 : vector<16x128xf32>
    %cst_22 = arith.constant 0.000000e+00 : f32
    %46 = vector.broadcast %cst_22 : f32 to vector<16x128xf32>
    %47 = arith.select %21, %45, %46 : vector<16x128xi1>, vector<16x128xf32>
    %c0_23 = arith.constant 0 : index
    %c0_24 = arith.constant 0 : index
    %48 = vector.load %arg8[%c0_23, %c0_24] : memref<16x128xf32, #tpu.memory_space<vmem>>, vector<16x128xf32>
    tpu.vector_store %arg8[%c0_23, %c0_24], %47 {strides = array<i32>} : memref<16x128xf32, #tpu.memory_space<vmem>>, vector<16x128xf32>,
    return
  }
  func.func @transform_0(%arg0: i32, %arg1: memref<128xi32, #tpu.memory_space<smem>>) -> (i32, i32) {
    %c0_i32 = arith.constant 0 : i32
    %c0_i32_0 = arith.constant 0 : i32
    %c0_i32_1 = arith.constant 0 : i32
    return %c0_i32, %c0_i32_0 : i32, i32
  }
  func.func @transform_1(%arg0: i32, %arg1: memref<128xi32, #tpu.memory_space<smem>>) -> (i32, i32) {
    %c0_i32 = arith.constant 0 : i32
    %c0_i32_0 = arith.constant 0 : i32
    %c0_i32_1 = arith.constant 0 : i32
    return %c0_i32, %c0_i32_0 : i32, i32
  }
  func.func @transform_2(%arg0: i32, %arg1: memref<128xi32, #tpu.memory_space<smem>>) -> (i32, i32) {
    %c0_i32 = arith.constant 0 : i32
    %c0_i32_0 = arith.constant 0 : i32
    %c0_i32_1 = arith.constant 0 : i32
    return %c0_i32, %c0_i32_0 : i32, i32
  }
  func.func @transform_3(%arg0: i32, %arg1: memref<128xi32, #tpu.memory_space<smem>>) -> (i32, i32) {
    %c0_i32 = arith.constant 0 : i32
    %c0_i32_0 = arith.constant 0 : i32
    %c0_i32_1 = arith.constant 0 : i32
    return %c0_i32, %c0_i32_0 : i32, i32
  }
  func.func @transform_4(%arg0: i32, %arg1: memref<128xi32, #tpu.memory_space<smem>>) -> (i32, i32) {
    %c0_i32 = arith.constant 0 : i32
    %c0_i32_0 = arith.constant 0 : i32
    %c0_i32_1 = arith.constant 0 : i32
    return %c0_i32, %c0_i32_0 : i32, i32
  }
  func.func @transform_5(%arg0: i32, %arg1: memref<128xi32, #tpu.memory_space<smem>>) -> (i32, i32) {
    %c0_i32 = arith.constant 0 : i32
    %c0_i32_0 = arith.constant 0 : i32
    %c0_i32_1 = arith.constant 0 : i32
    return %c0_i32, %c0_i32_0 : i32, i32
  }
  func.func @transform_6(%arg0: i32, %arg1: memref<128xi32, #tpu.memory_space<smem>>) -> (i32, i32) {
    %c0_i32 = arith.constant 0 : i32
    %c0_i32_0 = arith.constant 0 : i32
    return %arg0, %c0_i32 : i32, i32
  }
}

module attributes {stable_mosaic.version = 11 : i64} {
  func.func @kernel(%arg0: i32, %arg1: memref<128xi32, #tpu.memory_space<smem>>, %arg2: memref<1x1xf32, #tpu.memory_space<smem>>, %arg3: memref<32x128xf32, #tpu.memory_space<vmem>>, %arg4: memref<128x128xbf16, #tpu.memory_space<vmem>>, %arg5: memref<1x128xf32, #tpu.memory_space<vmem>>, %arg6: memref<1x128xf32, #tpu.memory_space<vmem>>, %arg7: memref<1x128xf32, #tpu.memory_space<vmem>>, %arg8: memref<16x128xf32, #tpu.memory_space<vmem>>, %arg9: memref<16x128xf32, #tpu.memory_space<vmem>>) attributes {dimension_semantics = [#tpu.dimension_semantics<parallel>], iteration_bounds = array<i64: 2>, scalar_prefetch = 1 : i64, scratch_operands = 1 : i64, tpu.core_type = #tpu.core_type<tc>, window_params = [{transform_indices = @transform_0, window_bounds = array<i64: 1, 1>}, {pipeline_mode = #tpu.pipeline_mode<synchronous>, transform_indices = @transform_1, window_bounds = array<i64: 32, 128>}, {pipeline_mode = #tpu.pipeline_mode<synchronous>, transform_indices = @transform_2, window_bounds = array<i64: 128, 128>}, {pipeline_mode = #tpu.pipeline_mode<synchronous>, transform_indices = @transform_3, window_bounds = array<i64: 1, 128>}, {pipeline_mode = #tpu.pipeline_mode<synchronous>, transform_indices = @transform_4, window_bounds = array<i64: 1, 128>}, {pipeline_mode = #tpu.pipeline_mode<synchronous>, transform_indices = @transform_5, window_bounds = array<i64: 1, 128>}, {transform_indices = @transform_6, window_bounds = array<i64: 16, 128>}]} {
    %c16_i32 = arith.constant 16 : i32
    %0 = arith.muli %arg0, %c16_i32 : i32
    %1 = tpu.assume_multiple %0, 8 : i32
    %c0_i32 = arith.constant 0 : i32
    %c16_i32_0 = arith.constant 16 : i32
    %2 = arith.addi %c0_i32, %c16_i32_0 : i32
    %c1_i32 = arith.constant 1 : i32
    scf.for %arg10 = %c0_i32 to %2 step %c1_i32  : i32 {
      %49 = arith.addi %1, %arg10 : i32
      %c4_i32 = arith.constant 4 : i32
      %50 = arith.muli %49, %c4_i32 : i32
      %51 = arith.index_cast %50 : i32 to index
      %52 = memref.load %arg1[%51] : memref<128xi32, #tpu.memory_space<smem>>
      %53 = arith.index_cast %52 : i32 to index
      %c0_25 = arith.constant 0 : index
      %54 = vector.load %arg3[%53, %c0_25] : memref<32x128xf32, #tpu.memory_space<vmem>>, vector<1x128xf32>
      %c1_i32_26 = arith.constant 1 : i32
      %55 = arith.addi %50, %c1_i32_26 : i32
      %56 = arith.index_cast %55 : i32 to index
      %57 = memref.load %arg1[%56] : memref<128xi32, #tpu.memory_space<smem>>
      %58 = arith.index_cast %57 : i32 to index
      %c0_27 = arith.constant 0 : index
      %59 = vector.load %arg3[%58, %c0_27] : memref<32x128xf32, #tpu.memory_space<vmem>>, vector<1x128xf32>
      %60 = arith.addf %54, %59 : vector<1x128xf32>
      %c2_i32 = arith.constant 2 : i32
      %61 = arith.addi %50, %c2_i32 : i32
      %62 = arith.index_cast %61 : i32 to index
      %63 = memref.load %arg1[%62] : memref<128xi32, #tpu.memory_space<smem>>
      %64 = arith.index_cast %63 : i32 to index
      %c0_28 = arith.constant 0 : index
      %65 = vector.load %arg3[%64, %c0_28] : memref<32x128xf32, #tpu.memory_space<vmem>>, vector<1x128xf32>
      %66 = arith.addf %60, %65 : vector<1x128xf32>
      %c3_i32 = arith.constant 3 : i32
      %67 = arith.addi %50, %c3_i32 : i32
      %68 = arith.index_cast %67 : i32 to index
      %69 = memref.load %arg1[%68] : memref<128xi32, #tpu.memory_space<smem>>
      %70 = arith.index_cast %69 : i32 to index
      %c0_29 = arith.constant 0 : index
      %71 = vector.load %arg3[%70, %c0_29] : memref<32x128xf32, #tpu.memory_space<vmem>>, vector<1x128xf32>
      %72 = arith.addf %66, %71 : vector<1x128xf32>
      %73 = arith.index_cast %arg10 : i32 to index
      %c0_30 = arith.constant 0 : index
      %74 = vector.load %arg9[%73, %c0_30] : memref<16x128xf32, #tpu.memory_space<vmem>>, vector<1x128xf32>
      tpu.vector_store %arg9[%73, %c0_30], %72 {strides = array<i32>} : memref<16x128xf32, #tpu.memory_space<vmem>>, vector<1x128xf32>,
    }
    %c16_i32_1 = arith.constant 16 : i32
    %c0 = arith.constant 0 : index
    %c0_2 = arith.constant 0 : index
    %3 = memref.load %arg2[%c0, %c0_2] : memref<1x1xf32, #tpu.memory_space<smem>>
    %cst = arith.constant 1.000000e+00 : f32
    %4 = arith.addf %cst, %3 : f32
    %5 = arith.index_cast %1 : i32 to index
    %c0_3 = arith.constant 0 : index
    %6 = vector.load %arg3[%5, %c0_3] : memref<32x128xf32, #tpu.memory_space<vmem>>, vector<16x128xf32>
    %7 = vector.broadcast %4 : f32 to vector<16x128xf32>
    %8 = arith.mulf %7, %6 : vector<16x128xf32>
    %c0_4 = arith.constant 0 : index
    %c0_5 = arith.constant 0 : index
    %9 = vector.load %arg9[%c0_4, %c0_5] : memref<16x128xf32, #tpu.memory_space<vmem>>, vector<16x128xf32>
    %10 = arith.addf %8, %9 : vector<16x128xf32>
    %11 = arith.truncf %10 : vector<16x128xf32> to vector<16x128xbf16>
    %c0_6 = arith.constant 0 : index
    %c0_7 = arith.constant 0 : index
    %12 = vector.load %arg4[%c0_6, %c0_7] : memref<128x128xbf16, #tpu.memory_space<vmem>>, vector<128x128xbf16>
    %cst_8 = arith.constant dense<0.000000e+00> : vector<16x128xf32>
    %13 = tpu.matmul %11, %12, %cst_8 {dimension_numbers = #tpu.dot_dimension_numbers<[1], [0], [0], [1], [0, 0, 1, 1], [], []>} : vector<16x128xbf16>, vector<128x128xbf16>, vector<16x128xf32> -> vector<16x128xf32>
    %c0_9 = arith.constant 0 : index
    %c0_10 = arith.constant 0 : index
    %14 = vector.load %arg5[%c0_9, %c0_10] : memref<1x128xf32, #tpu.memory_space<vmem>>, vector<1x128xf32>
    %15 = vector.broadcast %14 : vector<1x128xf32> to vector<16x128xf32>
    %16 = arith.addf %13, %15 : vector<16x128xf32>
    %c0_11 = arith.constant 0 : index
    %c0_12 = arith.constant 0 : index
    %17 = vector.load %arg6[%c0_11, %c0_12] : memref<1x128xf32, #tpu.memory_space<vmem>>, vector<1x128xf32>
    %c0_13 = arith.constant 0 : index
    %c0_14 = arith.constant 0 : index
    %18 = vector.load %arg7[%c0_13, %c0_14] : memref<1x128xf32, #tpu.memory_space<vmem>>, vector<1x128xf32>
    %19 = tpu.iota {dimensions = array<i32: 1>} : vector<16x128xi32>
    %c48_i32 = arith.constant 48 : i32
    %20 = vector.broadcast %c48_i32 : i32 to vector<16x128xi32>
    %21 = arith.cmpi slt, %19, %20 : vector<16x128xi32>
    %cst_15 = arith.constant 0.000000e+00 : f32
    %22 = vector.broadcast %cst_15 : f32 to vector<16x128xf32>
    %23 = arith.select %21, %16, %22 : vector<16x128xi1>, vector<16x128xf32>
    %cst_16 = arith.constant dense<0.000000e+00> : vector<16xf32>
    %24 = vector.multi_reduction <add>, %23, %cst_16 [1] : vector<16x128xf32> to vector<16xf32>
    %25 = vector.shape_cast %24 : vector<16xf32> to vector<16x1xf32>
    %cst_17 = arith.constant 0.020833334 : f32
    %26 = vector.broadcast %cst_17 : f32 to vector<16x1xf32>
    %27 = arith.mulf %25, %26 : vector<16x1xf32>
    %28 = vector.broadcast %27 : vector<16x1xf32> to vector<16x128xf32>
    %29 = arith.subf %16, %28 : vector<16x128xf32>
    %cst_18 = arith.constant 0.000000e+00 : f32
    %30 = vector.broadcast %cst_18 : f32 to vector<16x128xf32>
    %31 = arith.select %21, %29, %30 : vector<16x128xi1>, vector<16x128xf32>
    %32 = arith.mulf %31, %31 : vector<16x128xf32>
    %cst_19 = arith.constant dense<0.000000e+00> : vector<16xf32>
    %33 = vector.multi_reduction <add>, %32, %cst_19 [1] : vector<16x128xf32> to vector<16xf32>
    %34 = vector.shape_cast %33 : vector<16xf32> to vector<16x1xf32>
    %cst_20 = arith.constant 0.020833334 : f32
    %35 = vector.broadcast %cst_20 : f32 to vector<16x1xf32>
    %36 = arith.mulf %34, %35 : vector<16x1xf32>
    %cst_21 = arith.constant 9.99999974E-6 : f32
    %37 = vector.broadcast %cst_21 : f32 to vector<16x1xf32>
    %38 = arith.addf %36, %37 : vector<16x1xf32>
    %39 = math.rsqrt %38 : vector<16x1xf32>
    %40 = vector.broadcast %39 : vector<16x1xf32> to vector<16x128xf32>
    %41 = arith.mulf %31, %40 : vector<16x128xf32>
    %42 = vector.broadcast %17 : vector<1x128xf32> to vector<16x128xf32>
    %43 = arith.mulf %41, %42 : vector<16x128xf32>
    %44 = vector.broadcast %18 : vector<1x128xf32> to vector<16x128xf32>
    %45 = arith.addf %43, %44 : vector<16x128xf32>
    %cst_22 = arith.constant 0.000000e+00 : f32
    %46 = vector.broadcast %cst_22 : f32 to vector<16x128xf32>
    %47 = arith.select %21, %45, %46 : vector<16x128xi1>, vector<16x128xf32>
    %c0_23 = arith.constant 0 : index
    %c0_24 = arith.constant 0 : index
    %48 = vector.load %arg8[%c0_23, %c0_24] : memref<16x128xf32, #tpu.memory_space<vmem>>, vector<16x128xf32>
    tpu.vector_store %arg8[%c0_23, %c0_24], %47 {strides = array<i32>} : memref<16x128xf32, #tpu.memory_space<vmem>>, vector<16x128xf32>,
    return
  }
  func.func @transform_0(%arg0: i32, %arg1: memref<128xi32, #tpu.memory_space<smem>>) -> (i32, i32) {
    %c0_i32 = arith.constant 0 : i32
    %c0_i32_0 = arith.constant 0 : i32
    %c0_i32_1 = arith.constant 0 : i32
    return %c0_i32, %c0_i32_0 : i32, i32
  }
  func.func @transform_1(%arg0: i32, %arg1: memref<128xi32, #tpu.memory_space<smem>>) -> (i32, i32) {
    %c0_i32 = arith.constant 0 : i32
    %c0_i32_0 = arith.constant 0 : i32
    %c0_i32_1 = arith.constant 0 : i32
    return %c0_i32, %c0_i32_0 : i32, i32
  }
  func.func @transform_2(%arg0: i32, %arg1: memref<128xi32, #tpu.memory_space<smem>>) -> (i32, i32) {
    %c0_i32 = arith.constant 0 : i32
    %c0_i32_0 = arith.constant 0 : i32
    %c0_i32_1 = arith.constant 0 : i32
    return %c0_i32, %c0_i32_0 : i32, i32
  }
  func.func @transform_3(%arg0: i32, %arg1: memref<128xi32, #tpu.memory_space<smem>>) -> (i32, i32) {
    %c0_i32 = arith.constant 0 : i32
    %c0_i32_0 = arith.constant 0 : i32
    %c0_i32_1 = arith.constant 0 : i32
    return %c0_i32, %c0_i32_0 : i32, i32
  }
  func.func @transform_4(%arg0: i32, %arg1: memref<128xi32, #tpu.memory_space<smem>>) -> (i32, i32) {
    %c0_i32 = arith.constant 0 : i32
    %c0_i32_0 = arith.constant 0 : i32
    %c0_i32_1 = arith.constant 0 : i32
    return %c0_i32, %c0_i32_0 : i32, i32
  }
  func.func @transform_5(%arg0: i32, %arg1: memref<128xi32, #tpu.memory_space<smem>>) -> (i32, i32) {
    %c0_i32 = arith.constant 0 : i32
    %c0_i32_0 = arith.constant 0 : i32
    %c0_i32_1 = arith.constant 0 : i32
    return %c0_i32, %c0_i32_0 : i32, i32
  }
  func.func @transform_6(%arg0: i32, %arg1: memref<128xi32, #tpu.memory_space<smem>>) -> (i32, i32) {
    %c0_i32 = arith.constant 0 : i32
    %c0_i32_0 = arith.constant 0 : i32
    return %arg0, %c0_i32 : i32, i32
  }
}

</mosaic_0001>

<bundles_post_ra>
// kernel: tpu_custom_call.1
= control target key start
LH: loop header
LB: loop body
LE: loop exit
PB: predicated region body
PF: predicated region fallthrough
CT: control target
= control target key end

     0   :  { %s1125_s0 = inlined_call_operand.vmem [shape: s32[128], index: 0, kind: input, shape index: {}]   ;;  %s1126_s1 = inlined_call_operand.<no memory space> [shape: f32[1,1], index: 1, kind: input, shape index: {}]   ;;  %s1127_s2 = inlined_call_operand.hbm [shape: f32[32,128], index: 2, kind: input, shape index: {}]   ;;  %s1128_s3 = inlined_call_operand.hbm [shape: bf16[128,128], index: 3, kind: input, shape index: {}]   ;;  %s1129_s4 = inlined_call_operand.vmem [shape: f32[1,128], index: 4, kind: input, shape index: {}]   ;;  %s1130_s5 = inlined_call_operand.vmem [shape: f32[1,128], index: 5, kind: input, shape index: {}]   ;;  %s1131_s6 = inlined_call_operand.vmem [shape: f32[1,128], index: 6, kind: input, shape index: {}]   ;;  %s1132_s7 = inlined_call_operand.hbm [shape: f32[32,128], index: 7, kind: output, shape index: {}]  }
   0x1   :  { %s12_s26 = sshll.u32 %s1125_s0, 4  ;;  %16 = sst [smem:[#allocation5]] %s1126_s1  ;;  %s13_s26 = int_to_ptr.vmem [resolvable:$true] %s12_s26 }
   0x2   :  { %s718_s29 = scalar_lea.vmem %s13_s26, 16  ;;  %p723_p1 = scmp.lt.s32.totalorder %s13_s26, %s13_s26 }
   0x3   :  { %p719_p0 = scmp.ne.s32.totalorder %s13_s26, %s718_s29  ;;  %p724_p2 = scmp.lt.s32.totalorder %s718_s29, %s718_s29 }
   0x5   :  { %p725_p3 = por %p724_p2, %p723_p1 }
   0x7   :  { %p726_p4 = pnand %p725_p3, %p719_p0 }
   0x9   :  { %729 = shalt.err (!%p726_p4)  }
   0xa   :  { %s868_s30 = smov [#allocation4]  }
   0xb   :  { %15 = dma.vmem_to_smem %s13_s26, 16, %s868_s30, [#allocation3] }
   0xc   :  { %834 = dma.done.wait [#allocation3], 16 }
   0xd   :  { %835 = vsyncadd [#allocation3], 4294967280 }
   0xe   :  { %18 = sfence }
   0xf   :  { %19 = vsyncpa [#allocation7], 0 }
  0x10   :  { %20 = vsyncpa [#allocation10], 0 }
  0x11   :  { %21 = vsyncpa [#allocation8], 0 }
  0x12   :  { %23 = vsyncpa [#allocation8 + $0x1], 0  ;;  %s926_s0 = smov 0   ;;  %s928_s1 = smov 0  }
  0x13   :  { %s930_s8 = smov 0   ;;  %s932_s9 = smov 0  }
  0x14 LB: > { %s947_s10 = sadd.s32 4294967295, %s862_s9   ;;  %s573_s11 = sadd.s32 4294967294, %s862_s9   ;;  %s862_s9 = sphi %s932_s9, %s1154_s9   ;;  %s858_s8 = sphi %s930_s8, %s1153_s8   ;;  %s854_s1 = sphi %s928_s1, %s1152_s1   ;;  %s850_s0 = sphi %s926_s0, %s1151_s0  }
  0x15   : > { %s951_s12 = sadd.s32 1, %s862_s9   ;;  %s162_s13 = sadd.s32 1, %s858_s8 }
  0x16   : > { %s159_s14 = ssub.s32 %s862_s9, %s951_s12  ;;  %p172_p5 = scmp.ne.s32.totalorder %s858_s8, %s854_s1 }
  0x17   : > { %p160_p6 = scmp.eq.s32.totalorder %s159_s14, 0  ;;  %p173_p7 = scmp.eq.s32.totalorder %s947_s10, 1 }
  0x18   : > { %p178_p8 = scmp.ne.s32.totalorder %s854_s1, %s850_s0  ;;  %p179_p9 = scmp.eq.s32.totalorder %s573_s11, 1 }
  0x19   : > { %s962_s15 = scalar_select %p160_p6, %s858_s8, %s162_s13  }
  0x1a   : > { %p964_p10 = por %p173_p7, %p172_p5  ;;  %p968_p11 = por %p179_p9, %p178_p8 }
  0x1b   : > { %p574_p12 = scmp.ge.s32.totalorder %s862_s9, 1  ;;  %p186_p13 = scmp.lt.s32.totalorder %s862_s9, 3 }
  0x1c   : > { %s1137_s16 = scalar_select %p964_p10, 1, 0 }
  0x1d   : > { %s1138_s17 = scalar_select %p968_p11, 1, 0 }
  0x1e   : > { %p1133_p0 = scmp.eq.s32.totalorder %s947_s10, 0  ;;  %p975_p1 = pnand %p574_p12, %p186_p13 }
  0x1f   : > { %s869_s19 = smov [#allocation6]   ;;  %s870_s22 = smov [#allocation9]  }
  0x20   : > { %s1139_s18 = scalar_select %p975_p1, 1, 0 }
  0x21   : > { %s201_s20 = sshll.u32 %s869_s19, 4  ;;  %p639_p2 = pneg %p975_p1  ;;  %s202_s20 = int_to_ptr.vmem [resolvable:$true] %s201_s20 }
  0x22   : > { %s214_s23 = sshll.u32 %s870_s22, 4  ;;  %s730_s26 = scalar_lea.hbm %s1127_s2, 512  ;;  %s987_s23 = int_to_ptr.vmem [resolvable:$true] %s214_s23 }
  0x23   : > { %p983_p3 = pnand %p1133_p0, %p639_p2  ;;  %p731_p4 = scmp.ne.s32.totalorder %s1127_s2, %s730_s26 }
  0x24   : > { %p737_p8 = scmp.lt.u32.totalorder %s730_s26, %s1127_s2 }
  0x25   : > { %p732_p5 = pneg %p983_p3 }
  0x27   : > { %p733_p6 = pnand %p732_p5, %p731_p4 }
  0x29   : > { %p734_p7 = pneg %p733_p6 }
  0x2b   : > { %p739_p9 = pnand %p737_p8, %p734_p7 }
  0x2d   : > { %742 = shalt.err (!%p739_p9)
}
  0x2e   : > { %s743_s11 = scalar_lea.vmem %s202_s20, 512  ;;  %p751_p0 = scmp.lt.s32.totalorder %s202_s20, %s202_s20 }
  0x2f   : > { %p744_p12 = scmp.ne.s32.totalorder %s202_s20, %s743_s11  ;;  %p752_p11 = scmp.lt.s32.totalorder %s743_s11, %s743_s11 }
  0x31   : > { %p746_p13 = pnand %p744_p12, %p732_p5  ;;  %p753_p10 = por %p752_p11, %p751_p0 }
  0x33   : > { %p747_p2 = pneg %p746_p13 }
  0x35   : > { %p754_p1 = pnand %p753_p10, %p747_p2 }
  0x37   : > { %757 = shalt.err (!%p754_p1)
}
  0x38   : > { %s871_s13 = smov 128   ;;  %s872_s14 = smov 8  }
  0x39   : > { %642 = dma.hbm_to_vmem [thread:$0]  (!%p983_p3), %s1127_s2, 512, %s202_s20, [#allocation7], %s871_s13, %s871_s13, %s872_s14  }
  0x3a   : > { %s758_s26 = scalar_lea.hbm %s1128_s3, 1024 }
  0x3b   : > { %p759_p4 = scmp.ne.s32.totalorder %s1128_s3, %s758_s26  ;;  %p765_p0 = scmp.lt.u32.totalorder %s758_s26, %s1128_s3 }
  0x3d   : > { %p761_p10 = pnand %p759_p4, %p732_p5 }
  0x3f   : > { %p762_p11 = pneg %p761_p10 }
  0x41   : > { %p767_p1 = pnand %p765_p0, %p762_p11 }
  0x43   : > { %770 = shalt.err (!%p767_p1)
}
  0x44   : > { %s771_s20 = scalar_lea.vmem %s987_s23, 1024  ;;  %p779_p9 = scmp.lt.s32.totalorder %s987_s23, %s987_s23 }
  0x45   : > { %p772_p6 = scmp.ne.s32.totalorder %s987_s23, %s771_s20  ;;  %p780_p12 = scmp.lt.s32.totalorder %s771_s20, %s771_s20 }
  0x47   : > { %p774_p7 = pnand %p772_p6, %p732_p5  ;;  %p781_p13 = por %p780_p12, %p779_p9 }
  0x49   : > { %p775_p8 = pneg %p774_p7 }
  0x4b   : > { %p782_p2 = pnand %p781_p13, %p775_p8 }
  0x4d   : > { %785 = shalt.err (!%p782_p2)
}
  0x4e   : > { %s873_s11 = smov 64   ;;  %s874_s13 = smov 4  }
  0x4f   : > { %645 = dma.hbm_to_vmem [thread:$0]  (!%p983_p3), %s1128_s3, 1024, %s987_s23, [#allocation10], %s873_s11, %s873_s11, %s874_s13  }
  0x50   : > { %p1141_p4 = scmp.ne.s32.totalorder %s1139_s18, 0 }
  0x51   : > { %p1142_p5 = scmp.eq.s32.totalorder (!%p1141_p4), %s947_s10, 0 }
  0x52   : > { %239 = sbr.rel (%p1141_p4) target bundleno = 683 (0x2ab), region = 44 }
  0x59   : > { %837 = dma.done.wait (%p1142_p5), [#allocation7], 512   ;;  %p1143_p10 = pmov %p1142_p5 }
  0x5a   : > { %p1144_p11 = pmov %p1142_p5 }
  0x5b   : > { %839 = vsyncadd (%p1143_p10), [#allocation7], 4294966784 }
  0x5c   : > { %841 = dma.done.wait (%p1144_p11), [#allocation10], 1024   ;;  %p1145_p0 = pmov %p1142_p5 }
  0x5d   : > { %s1136_s21 = sand.u32 1, %s854_s1   ;;  %s864_s24 = smov 0  }
  0x5e   : > { %843 = vsyncadd (%p1145_p0), [#allocation10], 4294966272  ;;  %s580_s18 = sshll.u32 %s1136_s21, 4 }
  0x5f   : > { %s1050_s22 = scalar_lea.vmem [#allocation11], %s580_s18 }
  0x60 LB: >> { %s1146_s23 = sshll.u32 %s947_s10, 4  ;;  %s866_s24 = sphi %s864_s24, %s276_s24  }
  0x61   : >> { %s277_s25 = sadd.s32 %s866_s24, %s1146_s23  ;;  %s297_s23 = scalar_lea.vmem [#allocation2], %s866_s24 }
  0x62   : >> { %s582_s26 = sshll.u32 %s277_s25, 2  ;;  %s276_s24 = sadd.s32 1, %s866_s24  }
  0x63   : >> { %s279_s27 = sld [smem:[#allocation4 + %s582_s26]]  ;;  %s282_s28 = sadd.s32 1, %s582_s26 }
  0x64   : >> { %s283_s29 = sld [smem:[#allocation4 + %s282_s28]]  ;;  %s287_s30 = sadd.s32 2, %s582_s26 }
  0x65   : >> { %s288_s20 = sld [smem:[#allocation4 + %s287_s30]]  ;;  %s292_s11 = sadd.s32 3, %s582_s26 }
  0x66   : >> { %s293_s13 = sld [smem:[#allocation4 + %s292_s11]]  ;;  %p273_p3 = scmp.ge.s32.totalorder %s276_s24, 16  }
  0x67   : > { %v706_v7 = vld [vmem:[#allocation9] sm:$0xff] (%p273_p3)   ;;  %v875_v8 = vmov (%p273_p3), 0.0   ;;  %v707_v9 = vld [vmem:[#allocation9 + $0x8] sm:$0xff] (%p273_p3)   ;;  %vm876_vm0 = vmmov (%p273_p3), 0   ;;  %v708_v10 = vld [vmem:[#allocation9 + $0x10] sm:$0xff] (%p273_p3)   ;;  %s1147_s24 = sshll.u32 (%p273_p3), %s947_s10, 4  ;;  %v426_v26 = vlaneseq (%p273_p3) }
  0x68   : > { %609 = vmatprep.subr.bf16.mxu0 (%p273_p3), %v875_v8  ;;  %625 = vmatprep.mubr.msk.bf16.mxu0 (%p273_p3), %vm876_vm0, %v875_v8  ;;  %v709_v11 = vld [vmem:[#allocation9 + $0x18] sm:$0xff] (%p273_p3)   ;;  %v710_v12 = vld [vmem:[#allocation9 + $0x20] sm:$0xff] (%p273_p3)   ;;  %v711_v13 = vld [vmem:[#allocation9 + $0x28] sm:$0xff] (%p273_p3)   ;;  %s301_s25 = scalar_lea.vmem (%p273_p3), [#allocation6], %s1147_s24  ;;  %s599_s11 = sshll.u32 (%p273_p3), %s947_s10, 8 }
  0x69   : >> { %s280_s14 = scalar_lea.vmem [#allocation6], %s279_s27  ;;  %610 = vmatpush3.bf16.msra.mxu0 (%p273_p3), %v706_v7  ;;  %v302_v14 = vld [vmem:[%s301_s25] sm:$0xff] (%p273_p3)  ;;  %v303_v15 = vld [vmem:[%s301_s25 + $0x8] sm:$0xff] (%p273_p3)  ;;  %v427_v27 = vand.u32 (%p273_p3), 127, %v426_v26  ;;  %s1148_s10 = sand.u32 (%p273_p3), 1, %s854_s1  }
  0x6a   : >> { %v281_v0 = vld [vmem:[%s280_s14] sm:$0x1]  ;;  %s284_s19 = scalar_lea.vmem [#allocation6], %s283_s29  ;;  %611 = vmatprep.subr.bf16.mxu0 (%p273_p3), %v875_v8  ;;  %v713_v24 = vld [vmem:[#allocation9 + $0x38] sm:$0xff] (%p273_p3)   ;;  %p1149_p6 = scmp.ne.s32.totalorder (%p273_p3), %s1137_s16, 0 }
  0x6b   : >> { %v285_v1 = vld [vmem:[%s284_s19] sm:$0x1]  ;;  %s289_s18 = scalar_lea.vmem [#allocation6], %s288_s20  ;;  %vm428_vm1 = vcmp.lt.s32.totalorder (%p273_p3), %v427_v27, 48  ;;  %s877_s24 = smov (%p273_p3), [#allocation11]  }
  0x6c   : >> { %v286_v2 = vadd.f32 %v285_v1, %v281_v0  ;;  %v290_v3 = vld [vmem:[%s289_s18] sm:$0x1]  ;;  %s294_s21 = scalar_lea.vmem [#allocation6], %s293_s13  ;;  %275 = sbr.rel (!%p273_p3) target bundleno = 96 (0x60), region = 98 }
  0x6d   : >> { %v295_v4 = vld [vmem:[%s294_s21] sm:$0x1]  ;;  %612 = vmatpush3.bf16.msra.mxu0 (%p273_p3), %v707_v9  ;;  %s299_s21 = sld [smem:[#allocation5]] (%p273_p3)  ;;  %s489_s13 = sshll.u32 (%p273_p3), %s1050_s22, 4  ;;  %s1078_s13 = int_to_ptr.vmem [resolvable:$true] %s489_s13 }
  0x6e   : >> { %v291_v5 = vadd.f32 %v290_v3, %v286_v2  ;;  %613 = vmatprep.subr.bf16.mxu0 (%p273_p3), %v875_v8  ;;  %v712_v19 = vld [vmem:[#allocation9 + $0x30] sm:$0xff] (%p273_p3)   ;;  %s1076_s18 = scalar_lea.hbm (%p273_p3), %s1132_s7, %s599_s11  ;;  %s790_s25 = sshll.u32 (%p273_p3), %s877_s24, 4  ;;  %s791_s25 = int_to_ptr.vmem [resolvable:$false] %s790_s25 }
  0x6f   : > { %v583_v28 = vld [vmem:[%s1129_s4] ss:$0 sm:$0xff] (%p273_p3)  ;;  %s792_s26 = scalar_lea.vmem (%p273_p3), %s791_s25, 512  ;;  %p793_p9 = scmp.lt.s32.totalorder (%p273_p3), %s1078_s13, %s791_s25 }
  0x70   : >> { %v296_v6 = vadd.f32 %v295_v4, %v291_v5  ;;  %v592_v54 = vld [vmem:[%s1130_s5] ss:$0 sm:$0xff] (%p273_p3) }
  0x71   : > { %614 = vmatpush3.bf16.msra.mxu0 (%p273_p3), %v708_v10  ;;  %v593_v56 = vld [vmem:[%s1131_s6] ss:$0 sm:$0xff] (%p273_p3) }
  0x72   : >> { %298 = vst [vmem:[%s297_s23] sm:$0x1] %v296_v6  ;;  %615 = vmatprep.subr.bf16.mxu0 (%p273_p3), %v875_v8 }
  0x73   : > { %s300_s23 = sadd.f32 1.0, %s299_s21  ;;  %s1084_s21 = scalar_lea.sflag [#allocation8], %s1148_s10 }
  0x75   : > { %616 = vmatpush3.bf16.msra.mxu0 %v709_v11  ;;  %v304_v16 = vstv %s300_s23  ;;  %s786_s23 = scalar_lea.vmem %s1078_s13, 256 }
  0x76   : > { %617 = vmatprep.subr.bf16.mxu0 %v875_v8  ;;  %v305_v17 = vmul.f32 %v304_v16, %v302_v14  ;;  %v306_v18 = vmul.f32 %v304_v16, %v303_v15  ;;  %p787_p1 = scmp.ne.s32.totalorder %s1078_s13, %s786_s23  ;;  %p794_p12 = scmp.lt.s32.totalorder %s792_s26, %s786_s23 }
  0x78   : > { %p788_p7 = pnand %p787_p1, %p1149_p6  ;;  %p795_p13 = por %p794_p12, %p793_p9 }
  0x79   : > { %618 = vmatpush3.bf16.msra.mxu0 %v710_v12  ;;  %v307_v20 = vld [vmem:[#allocation2] sm:$0xff]  ;;  %v308_v21 = vld [vmem:[#allocation2 + $0x8] sm:$0xff] }
  0x7a   : > { %619 = vmatprep.subr.bf16.mxu0 %v875_v8  ;;  %v309_v22 = vadd.f32 %v307_v20, %v305_v17  ;;  %v310_v23 = vadd.f32 %v308_v21, %v306_v18  ;;  %p789_p8 = pneg %p788_p7 }
  0x7c   : > { %v311_v25 = vpack.c.bf16 %v310_v23, %v309_v22  ;;  %p796_p2 = pnand %p795_p13, %p789_p8 }
  0x7d   : > { %620 = vmatpush3.bf16.msra.mxu0 %v711_v13 }
  0x7e   : > { %621 = vmatprep.subr.bf16.mxu0 %v875_v8 }
  0x81   : > { %622 = vmatpush3.bf16.msra.mxu0 %v712_v19 }
  0x82   : > { %623 = vmatprep.subr.bf16.mxu0 %v875_v8 }
  0x85   : > { %624 = vmatpush3.bf16.msra.mxu0 %v713_v24 }
  0x88   : > { %626 = vmatmul.mubr.bf16.vlgmr.msra.gmra.mrb[0].mxu0 %v311_v25 }
 0x15b   : > { %v417_v29 = vpop.f32.mrb[0].mxu0 }
 0x15c   : > { %v418_v30 = vadd.f32 %v583_v28, %v417_v29  ;;  %v627_v31 = vpop.f32.mrb[1].mxu0 }
 0x15d   : > { %v420_v32 = vpop.f32.mrb[2].mxu0 }
 0x15e   : > { %v421_v33 = vadd.f32 %v583_v28, %v420_v32  ;;  %v628_v34 = vpop.f32.mrb[3].mxu0  ;;  %v429_v35 = vsel %vm428_vm1, %v418_v30, 0.0 }
 0x15f   : > { %431 = vadd.xlane.f32.xlu0 %v429_v35 }
 0x160   : > { %v430_v36 = vsel %vm428_vm1, %v421_v33, 0.0 }
 0x163   : > { %433 = vadd.xlane.f32.xlu0 %v430_v36 }
 0x1ec   : > { %v432_v37 = vpop.xlane.xlu0 %431 }
 0x1ed   : > { %v435_v38 = vmul.f32 0.020833334, %v432_v37 }
 0x1ef   : > { %v437_v39 = vsub.f32 %v418_v30, %v435_v38 }
 0x1f0   : > { %v434_v40 = vpop.xlane.xlu0 %433 }
 0x1f1   : > { %v436_v41 = vmul.f32 0.020833334, %v434_v40  ;;  %v439_v42 = vsel %vm428_vm1, %v437_v39, 0.0 }
 0x1f2   : > { %v441_v43 = vmul.f32 %v439_v42, %v439_v42 }
 0x1f3   : > { %v438_v44 = vsub.f32 %v421_v33, %v436_v41 }
 0x1f4   : > { %443 = vadd.xlane.f32.xlu1 %v441_v43 }
 0x1f5   : > { %v440_v45 = vsel %vm428_vm1, %v438_v44, 0.0 }
 0x1f6   : > { %v442_v46 = vmul.f32 %v440_v45, %v440_v45 }
 0x1f8   : > { %445 = vadd.xlane.f32.xlu1 %v442_v46 }
 0x281   : > { %v444_v47 = vpop.xlane.xlu1 %443 }
 0x282   : > { %v447_v48 = vmul.f32 0.020833334, %v444_v47 }
 0x284   : > { %v449_v49 = vadd.f32 1e-05, %v447_v48 }
 0x285   : > { %v446_v50 = vpop.xlane.xlu1 %445 }
 0x286   : > { %714 = vrsqrt.f32 %v449_v49  ;;  %v448_v51 = vmul.f32 0.020833334, %v446_v50 }
 0x288   : > { %v450_v52 = vadd.f32 1e-05, %v448_v51 }
 0x28a   : > { %716 = vrsqrt.f32 %v450_v52 }
 0x290   : > { %v715_v53 = vpop.eup %714 }
 0x291   : > { %v453_v55 = vmul.f32 %v715_v53, %v439_v42 }
 0x293   : > { %v461_v57 = vmul.f32 %v592_v54, %v453_v55 }
 0x294   : > { %v717_v58 = vpop.eup %716 }
 0x295   : > { %v454_v59 = vmul.f32 %v717_v58, %v440_v45  ;;  %v469_v60 = vadd.f32 %v593_v56, %v461_v57 }
 0x297   : > { %v462_v61 = vmul.f32 %v592_v54, %v454_v59  ;;  %v471_v62 = vsel %vm428_vm1, %v469_v60, 0.0 }
 0x298   : > { %473 = vst [vmem:[%s1050_s22] sm:$0xff] %v471_v62 }
 0x299   : > { %v470_v63 = vadd.f32 %v593_v56, %v462_v61 }
 0x29b   : > { %v472_v0 = vsel %vm428_vm1, %v470_v63, 0.0 }
 0x29c   : > { %474 = vst [vmem:[%s1050_s22 + $0x8] sm:$0xff] %v472_v0 }
 0x29d   : > { %799 = shalt.err (!%p796_p2)
}
 0x29e   : > { %s800_s22 = scalar_lea.hbm %s1076_s18, 256  ;;  %s804_s29 = scalar_lea.hbm %s1132_s7, 512 }
 0x29f   : > { %p801_p4 = scmp.ne.s32.totalorder %s1076_s18, %s800_s22  ;;  %p805_p11 = scmp.lt.u32.totalorder %s1076_s18, %s1132_s7 }
 0x2a0   : > { %p806_p0 = scmp.lt.u32.totalorder %s804_s29, %s800_s22  ;;  %p808_p1 = scmp.lt.u32.totalorder %s800_s22, %s1076_s18 }
 0x2a1   : > { %p802_p5 = pnand %p801_p4, %p1149_p6 }
 0x2a2   : > { %p807_p3 = por %p806_p0, %p805_p11 }
 0x2a3   : > { %p803_p10 = pneg %p802_p5 }
 0x2a4   : > { %p809_p7 = por %p808_p1, %p807_p3 }
 0x2a6   : > { %p810_p8 = pnand %p809_p7, %p803_p10 }
 0x2a8   : > { %813 = shalt.err (!%p810_p8)
}
 0x2a9   : > { %s878_s11 = smov 128   ;;  %s879_s14 = smov 8  }
 0x2aa   : > { %637 = dma.vmem_to_hbm [thread:$0]  (%p1149_p6), %s1078_s13, 256, %s1076_s18, %s1084_s21, %s878_s11, %s878_s11, %s879_s14  }
 0x2ab PF: > { %p654_p9 = scmp.ge.s32.totalorder %s862_s9, 2  ;;  %s504_s19 = sand.u32 1, %s850_s0  }
 0x2ac   : > { %p1150_p12 = scmp.ne.s32.totalorder %s1138_s17, 0  ;;  %s505_s10 = scalar_lea.sflag [#allocation8], %s504_s19 }
 0x2ae   : > { %p647_p13 = pnand %p654_p9, %p1150_p12 }
 0x2b0   : > { %845 = dma.done.wait (!%p647_p13), %s505_s10, 256  }
 0x2b1   : > { %847 = vsyncadd (!%p647_p13), %s505_s10, 4294967040  ;;  %p26_p2 = scmp.ge.s32.totalorder %s951_s12, 4   ;;  %s1151_s0 = smov %s854_s1 }
 0x2b2   : > { %s1152_s1 = smov %s858_s8  ;;  %s1153_s8 = smov %s962_s15 }
 0x2b3   : > { %s1154_s9 = smov %s951_s12  ;;  %28 = sbr.rel (!%p26_p2) target bundleno = 20 (0x14), region = 109 }
 0x2ba   :  { %510 = vsyncpa [#allocation7], 1 }
 0x2bb   :  { %512 = vsyncpa [#allocation7 + $0x1], 1 }
 0x2bc   :  { %513 = vsyncpa [#allocation10], 1 }
 0x2bd   :  { %514 = vsyncpa [#allocation8], 1 }
 0x2be   :  { %516 = vsyncpa [#allocation8 + $0x1], 1 }

// kernel: tpu_custom_call.1
= control target key start
LH: loop header
LB: loop body
LE: loop exit
PB: predicated region body
PF: predicated region fallthrough
CT: control target
= control target key end

     0   :  { %s1125_s0 = inlined_call_operand.vmem [shape: s32[128], index: 0, kind: input, shape index: {}]   ;;  %s1126_s1 = inlined_call_operand.<no memory space> [shape: f32[1,1], index: 1, kind: input, shape index: {}]   ;;  %s1127_s2 = inlined_call_operand.hbm [shape: f32[32,128], index: 2, kind: input, shape index: {}]   ;;  %s1128_s3 = inlined_call_operand.hbm [shape: bf16[128,128], index: 3, kind: input, shape index: {}]   ;;  %s1129_s4 = inlined_call_operand.vmem [shape: f32[1,128], index: 4, kind: input, shape index: {}]   ;;  %s1130_s5 = inlined_call_operand.vmem [shape: f32[1,128], index: 5, kind: input, shape index: {}]   ;;  %s1131_s6 = inlined_call_operand.vmem [shape: f32[1,128], index: 6, kind: input, shape index: {}]   ;;  %s1132_s7 = inlined_call_operand.hbm [shape: f32[32,128], index: 7, kind: output, shape index: {}]  }
   0x1   :  { %s12_s26 = sshll.u32 %s1125_s0, 4  ;;  %16 = sst [smem:[#allocation5]] %s1126_s1  ;;  %s13_s26 = int_to_ptr.vmem [resolvable:$true] %s12_s26 }
   0x2   :  { %s718_s29 = scalar_lea.vmem %s13_s26, 16  ;;  %p723_p1 = scmp.lt.s32.totalorder %s13_s26, %s13_s26 }
   0x3   :  { %p719_p0 = scmp.ne.s32.totalorder %s13_s26, %s718_s29  ;;  %p724_p2 = scmp.lt.s32.totalorder %s718_s29, %s718_s29 }
   0x5   :  { %p725_p3 = por %p724_p2, %p723_p1 }
   0x7   :  { %p726_p4 = pnand %p725_p3, %p719_p0 }
   0x9   :  { %729 = shalt.err (!%p726_p4)  }
   0xa   :  { %s868_s30 = smov [#allocation4]  }
   0xb   :  { %15 = dma.vmem_to_smem %s13_s26, 16, %s868_s30, [#allocation3] }
   0xc   :  { %834 = dma.done.wait [#allocation3], 16 }
   0xd   :  { %835 = vsyncadd [#allocation3], 4294967280 }
   0xe   :  { %18 = sfence }
   0xf   :  { %19 = vsyncpa [#allocation7], 0 }
  0x10   :  { %20 = vsyncpa [#allocation10], 0 }
  0x11   :  { %21 = vsyncpa [#allocation8], 0 }
  0x12   :  { %23 = vsyncpa [#allocation8 + $0x1], 0  ;;  %s926_s0 = smov 0   ;;  %s928_s1 = smov 0  }
  0x13   :  { %s930_s8 = smov 0   ;;  %s932_s9 = smov 0  }
  0x14 LB: > { %s947_s10 = sadd.s32 4294967295, %s862_s9   ;;  %s573_s11 = sadd.s32 4294967294, %s862_s9   ;;  %s862_s9 = sphi %s932_s9, %s1154_s9   ;;  %s858_s8 = sphi %s930_s8, %s1153_s8   ;;  %s854_s1 = sphi %s928_s1, %s1152_s1   ;;  %s850_s0 = sphi %s926_s0, %s1151_s0  }
  0x15   : > { %s951_s12 = sadd.s32 1, %s862_s9   ;;  %s162_s13 = sadd.s32 1, %s858_s8 }
  0x16   : > { %s159_s14 = ssub.s32 %s862_s9, %s951_s12  ;;  %p172_p5 = scmp.ne.s32.totalorder %s858_s8, %s854_s1 }
  0x17   : > { %p160_p6 = scmp.eq.s32.totalorder %s159_s14, 0  ;;  %p173_p7 = scmp.eq.s32.totalorder %s947_s10, 1 }
  0x18   : > { %p178_p8 = scmp.ne.s32.totalorder %s854_s1, %s850_s0  ;;  %p179_p9 = scmp.eq.s32.totalorder %s573_s11, 1 }
  0x19   : > { %s962_s15 = scalar_select %p160_p6, %s858_s8, %s162_s13  }
  0x1a   : > { %p964_p10 = por %p173_p7, %p172_p5  ;;  %p968_p11 = por %p179_p9, %p178_p8 }
  0x1b   : > { %p574_p12 = scmp.ge.s32.totalorder %s862_s9, 1  ;;  %p186_p13 = scmp.lt.s32.totalorder %s862_s9, 3 }
  0x1c   : > { %s1137_s16 = scalar_select %p964_p10, 1, 0 }
  0x1d   : > { %s1138_s17 = scalar_select %p968_p11, 1, 0 }
  0x1e   : > { %p1133_p0 = scmp.eq.s32.totalorder %s947_s10, 0  ;;  %p975_p1 = pnand %p574_p12, %p186_p13 }
  0x1f   : > { %s869_s19 = smov [#allocation6]   ;;  %s870_s22 = smov [#allocation9]  }
  0x20   : > { %s1139_s18 = scalar_select %p975_p1, 1, 0 }
  0x21   : > { %s201_s20 = sshll.u32 %s869_s19, 4  ;;  %p639_p2 = pneg %p975_p1  ;;  %s202_s20 = int_to_ptr.vmem [resolvable:$true] %s201_s20 }
  0x22   : > { %s214_s23 = sshll.u32 %s870_s22, 4  ;;  %s730_s26 = scalar_lea.hbm %s1127_s2, 512  ;;  %s987_s23 = int_to_ptr.vmem [resolvable:$true] %s214_s23 }
  0x23   : > { %p983_p3 = pnand %p1133_p0, %p639_p2  ;;  %p731_p4 = scmp.ne.s32.totalorder %s1127_s2, %s730_s26 }
  0x24   : > { %p737_p8 = scmp.lt.u32.totalorder %s730_s26, %s1127_s2 }
  0x25   : > { %p732_p5 = pneg %p983_p3 }
  0x27   : > { %p733_p6 = pnand %p732_p5, %p731_p4 }
  0x29   : > { %p734_p7 = pneg %p733_p6 }
  0x2b   : > { %p739_p9 = pnand %p737_p8, %p734_p7 }
  0x2d   : > { %742 = shalt.err (!%p739_p9)
}
  0x2e   : > { %s743_s11 = scalar_lea.vmem %s202_s20, 512  ;;  %p751_p0 = scmp.lt.s32.totalorder %s202_s20, %s202_s20 }
  0x2f   : > { %p744_p12 = scmp.ne.s32.totalorder %s202_s20, %s743_s11  ;;  %p752_p11 = scmp.lt.s32.totalorder %s743_s11, %s743_s11 }
  0x31   : > { %p746_p13 = pnand %p744_p12, %p732_p5  ;;  %p753_p10 = por %p752_p11, %p751_p0 }
  0x33   : > { %p747_p2 = pneg %p746_p13 }
  0x35   : > { %p754_p1 = pnand %p753_p10, %p747_p2 }
  0x37   : > { %757 = shalt.err (!%p754_p1)
}
  0x38   : > { %s871_s13 = smov 128   ;;  %s872_s14 = smov 8  }
  0x39   : > { %642 = dma.hbm_to_vmem [thread:$0]  (!%p983_p3), %s1127_s2, 512, %s202_s20, [#allocation7], %s871_s13, %s871_s13, %s872_s14  }
  0x3a   : > { %s758_s26 = scalar_lea.hbm %s1128_s3, 1024 }
  0x3b   : > { %p759_p4 = scmp.ne.s32.totalorder %s1128_s3, %s758_s26  ;;  %p765_p0 = scmp.lt.u32.totalorder %s758_s26, %s1128_s3 }
  0x3d   : > { %p761_p10 = pnand %p759_p4, %p732_p5 }
  0x3f   : > { %p762_p11 = pneg %p761_p10 }
  0x41   : > { %p767_p1 = pnand %p765_p0, %p762_p11 }
  0x43   : > { %770 = shalt.err (!%p767_p1)
}
  0x44   : > { %s771_s20 = scalar_lea.vmem %s987_s23, 1024  ;;  %p779_p9 = scmp.lt.s32.totalorder %s987_s23, %s987_s23 }
  0x45   : > { %p772_p6 = scmp.ne.s32.totalorder %s987_s23, %s771_s20  ;;  %p780_p12 = scmp.lt.s32.totalorder %s771_s20, %s771_s20 }
  0x47   : > { %p774_p7 = pnand %p772_p6, %p732_p5  ;;  %p781_p13 = por %p780_p12, %p779_p9 }
  0x49   : > { %p775_p8 = pneg %p774_p7 }
  0x4b   : > { %p782_p2 = pnand %p781_p13, %p775_p8 }
  0x4d   : > { %785 = shalt.err (!%p782_p2)
}
  0x4e   : > { %s873_s11 = smov 64   ;;  %s874_s13 = smov 4  }
  0x4f   : > { %645 = dma.hbm_to_vmem [thread:$0]  (!%p983_p3), %s1128_s3, 1024, %s987_s23, [#allocation10], %s873_s11, %s873_s11, %s874_s13  }
  0x50   : > { %p1141_p4 = scmp.ne.s32.totalorder %s1139_s18, 0 }
  0x51   : > { %p1142_p5 = scmp.eq.s32.totalorder (!%p1141_p4), %s947_s10, 0 }
  0x52   : > { %239 = sbr.rel (%p1141_p4) target bundleno = 683 (0x2ab), region = 44 }
  0x59   : > { %837 = dma.done.wait (%p1142_p5), [#allocation7], 512   ;;  %p1143_p10 = pmov %p1142_p5 }
  0x5a   : > { %p1144_p11 = pmov %p1142_p5 }
  0x5b   : > { %839 = vsyncadd (%p1143_p10), [#allocation7], 4294966784 }
  0x5c   : > { %841 = dma.done.wait (%p1144_p11), [#allocation10], 1024   ;;  %p1145_p0 = pmov %p1142_p5 }
  0x5d   : > { %s1136_s21 = sand.u32 1, %s854_s1   ;;  %s864_s24 = smov 0  }
  0x5e   : > { %843 = vsyncadd (%p1145_p0), [#allocation10], 4294966272  ;;  %s580_s18 = sshll.u32 %s1136_s21, 4 }
  0x5f   : > { %s1050_s22 = scalar_lea.vmem [#allocation11], %s580_s18 }
  0x60 LB: >> { %s1146_s23 = sshll.u32 %s947_s10, 4  ;;  %s866_s24 = sphi %s864_s24, %s276_s24  }
  0x61   : >> { %s277_s25 = sadd.s32 %s866_s24, %s1146_s23  ;;  %s297_s23 = scalar_lea.vmem [#allocation2], %s866_s24 }
  0x62   : >> { %s582_s26 = sshll.u32 %s277_s25, 2  ;;  %s276_s24 = sadd.s32 1, %s866_s24  }
  0x63   : >> { %s279_s27 = sld [smem:[#allocation4 + %s582_s26]]  ;;  %s282_s28 = sadd.s32 1, %s582_s26 }
  0x64   : >> { %s283_s29 = sld [smem:[#allocation4 + %s282_s28]]  ;;  %s287_s30 = sadd.s32 2, %s582_s26 }
  0x65   : >> { %s288_s20 = sld [smem:[#allocation4 + %s287_s30]]  ;;  %s292_s11 = sadd.s32 3, %s582_s26 }
  0x66   : >> { %s293_s13 = sld [smem:[#allocation4 + %s292_s11]]  ;;  %p273_p3 = scmp.ge.s32.totalorder %s276_s24, 16  }
  0x67   : > { %v706_v7 = vld [vmem:[#allocation9] sm:$0xff] (%p273_p3)   ;;  %v875_v8 = vmov (%p273_p3), 0.0   ;;  %v707_v9 = vld [vmem:[#allocation9 + $0x8] sm:$0xff] (%p273_p3)   ;;  %vm876_vm0 = vmmov (%p273_p3), 0   ;;  %v708_v10 = vld [vmem:[#allocation9 + $0x10] sm:$0xff] (%p273_p3)   ;;  %s1147_s24 = sshll.u32 (%p273_p3), %s947_s10, 4  ;;  %v426_v26 = vlaneseq (%p273_p3) }
  0x68   : > { %609 = vmatprep.subr.bf16.mxu0 (%p273_p3), %v875_v8  ;;  %625 = vmatprep.mubr.msk.bf16.mxu0 (%p273_p3), %vm876_vm0, %v875_v8  ;;  %v709_v11 = vld [vmem:[#allocation9 + $0x18] sm:$0xff] (%p273_p3)   ;;  %v710_v12 = vld [vmem:[#allocation9 + $0x20] sm:$0xff] (%p273_p3)   ;;  %v711_v13 = vld [vmem:[#allocation9 + $0x28] sm:$0xff] (%p273_p3)   ;;  %s301_s25 = scalar_lea.vmem (%p273_p3), [#allocation6], %s1147_s24  ;;  %s599_s11 = sshll.u32 (%p273_p3), %s947_s10, 8 }
  0x69   : >> { %s280_s14 = scalar_lea.vmem [#allocation6], %s279_s27  ;;  %610 = vmatpush3.bf16.msra.mxu0 (%p273_p3), %v706_v7  ;;  %v302_v14 = vld [vmem:[%s301_s25] sm:$0xff] (%p273_p3)  ;;  %v303_v15 = vld [vmem:[%s301_s25 + $0x8] sm:$0xff] (%p273_p3)  ;;  %v427_v27 = vand.u32 (%p273_p3), 127, %v426_v26  ;;  %s1148_s10 = sand.u32 (%p273_p3), 1, %s854_s1  }
  0x6a   : >> { %v281_v0 = vld [vmem:[%s280_s14] sm:$0x1]  ;;  %s284_s19 = scalar_lea.vmem [#allocation6], %s283_s29  ;;  %611 = vmatprep.subr.bf16.mxu0 (%p273_p3), %v875_v8  ;;  %v713_v24 = vld [vmem:[#allocation9 + $0x38] sm:$0xff] (%p273_p3)   ;;  %p1149_p6 = scmp.ne.s32.totalorder (%p273_p3), %s1137_s16, 0 }
  0x6b   : >> { %v285_v1 = vld [vmem:[%s284_s19] sm:$0x1]  ;;  %s289_s18 = scalar_lea.vmem [#allocation6], %s288_s20  ;;  %vm428_vm1 = vcmp.lt.s32.totalorder (%p273_p3), %v427_v27, 48  ;;  %s877_s24 = smov (%p273_p3), [#allocation11]  }
  0x6c   : >> { %v286_v2 = vadd.f32 %v285_v1, %v281_v0  ;;  %v290_v3 = vld [vmem:[%s289_s18] sm:$0x1]  ;;  %s294_s21 = scalar_lea.vmem [#allocation6], %s293_s13  ;;  %275 = sbr.rel (!%p273_p3) target bundleno = 96 (0x60), region = 98 }
  0x6d   : >> { %v295_v4 = vld [vmem:[%s294_s21] sm:$0x1]  ;;  %612 = vmatpush3.bf16.msra.mxu0 (%p273_p3), %v707_v9  ;;  %s299_s21 = sld [smem:[#allocation5]] (%p273_p3)  ;;  %s489_s13 = sshll.u32 (%p273_p3), %s1050_s22, 4  ;;  %s1078_s13 = int_to_ptr.vmem [resolvable:$true] %s489_s13 }
  0x6e   : >> { %v291_v5 = vadd.f32 %v290_v3, %v286_v2  ;;  %613 = vmatprep.subr.bf16.mxu0 (%p273_p3), %v875_v8  ;;  %v712_v19 = vld [vmem:[#allocation9 + $0x30] sm:$0xff] (%p273_p3)   ;;  %s1076_s18 = scalar_lea.hbm (%p273_p3), %s1132_s7, %s599_s11  ;;  %s790_s25 = sshll.u32 (%p273_p3), %s877_s24, 4  ;;  %s791_s25 = int_to_ptr.vmem [resolvable:$false] %s790_s25 }
  0x6f   : > { %v583_v28 = vld [vmem:[%s1129_s4] ss:$0 sm:$0xff] (%p273_p3)  ;;  %s792_s26 = scalar_lea.vmem (%p273_p3), %s791_s25, 512  ;;  %p793_p9 = scmp.lt.s32.totalorder (%p273_p3), %s1078_s13, %s791_s25 }
  0x70   : >> { %v296_v6 = vadd.f32 %v295_v4, %v291_v5  ;;  %v592_v54 = vld [vmem:[%s1130_s5] ss:$0 sm:$0xff] (%p273_p3) }
  0x71   : > { %614 = vmatpush3.bf16.msra.mxu0 (%p273_p3), %v708_v10  ;;  %v593_v56 = vld [vmem:[%s1131_s6] ss:$0 sm:$0xff] (%p273_p3) }
  0x72   : >> { %298 = vst [vmem:[%s297_s23] sm:$0x1] %v296_v6  ;;  %615 = vmatprep.subr.bf16.mxu0 (%p273_p3), %v875_v8 }
  0x73   : > { %s300_s23 = sadd.f32 1.0, %s299_s21  ;;  %s1084_s21 = scalar_lea.sflag [#allocation8], %s1148_s10 }
  0x75   : > { %616 = vmatpush3.bf16.msra.mxu0 %v709_v11  ;;  %v304_v16 = vstv %s300_s23  ;;  %s786_s23 = scalar_lea.vmem %s1078_s13, 256 }
  0x76   : > { %617 = vmatprep.subr.bf16.mxu0 %v875_v8  ;;  %v305_v17 = vmul.f32 %v304_v16, %v302_v14  ;;  %v306_v18 = vmul.f32 %v304_v16, %v303_v15  ;;  %p787_p1 = scmp.ne.s32.totalorder %s1078_s13, %s786_s23  ;;  %p794_p12 = scmp.lt.s32.totalorder %s792_s26, %s786_s23 }
  0x78   : > { %p788_p7 = pnand %p787_p1, %p1149_p6  ;;  %p795_p13 = por %p794_p12, %p793_p9 }
  0x79   : > { %618 = vmatpush3.bf16.msra.mxu0 %v710_v12  ;;  %v307_v20 = vld [vmem:[#allocation2] sm:$0xff]  ;;  %v308_v21 = vld [vmem:[#allocation2 + $0x8] sm:$0xff] }
  0x7a   : > { %619 = vmatprep.subr.bf16.mxu0 %v875_v8  ;;  %v309_v22 = vadd.f32 %v307_v20, %v305_v17  ;;  %v310_v23 = vadd.f32 %v308_v21, %v306_v18  ;;  %p789_p8 = pneg %p788_p7 }
  0x7c   : > { %v311_v25 = vpack.c.bf16 %v310_v23, %v309_v22  ;;  %p796_p2 = pnand %p795_p13, %p789_p8 }
  0x7d   : > { %620 = vmatpush3.bf16.msra.mxu0 %v711_v13 }
  0x7e   : > { %621 = vmatprep.subr.bf16.mxu0 %v875_v8 }
  0x81   : > { %622 = vmatpush3.bf16.msra.mxu0 %v712_v19 }
  0x82   : > { %623 = vmatprep.subr.bf16.mxu0 %v875_v8 }
  0x85   : > { %624 = vmatpush3.bf16.msra.mxu0 %v713_v24 }
  0x88   : > { %626 = vmatmul.mubr.bf16.vlgmr.msra.gmra.mrb[0].mxu0 %v311_v25 }
 0x15b   : > { %v417_v29 = vpop.f32.mrb[0].mxu0 }
 0x15c   : > { %v418_v30 = vadd.f32 %v583_v28, %v417_v29  ;;  %v627_v31 = vpop.f32.mrb[1].mxu0 }
 0x15d   : > { %v420_v32 = vpop.f32.mrb[2].mxu0 }
 0x15e   : > { %v421_v33 = vadd.f32 %v583_v28, %v420_v32  ;;  %v628_v34 = vpop.f32.mrb[3].mxu0  ;;  %v429_v35 = vsel %vm428_vm1, %v418_v30, 0.0 }
 0x15f   : > { %431 = vadd.xlane.f32.xlu0 %v429_v35 }
 0x160   : > { %v430_v36 = vsel %vm428_vm1, %v421_v33, 0.0 }
 0x163   : > { %433 = vadd.xlane.f32.xlu0 %v430_v36 }
 0x1ec   : > { %v432_v37 = vpop.xlane.xlu0 %431 }
 0x1ed   : > { %v435_v38 = vmul.f32 0.020833334, %v432_v37 }
 0x1ef   : > { %v437_v39 = vsub.f32 %v418_v30, %v435_v38 }
 0x1f0   : > { %v434_v40 = vpop.xlane.xlu0 %433 }
 0x1f1   : > { %v436_v41 = vmul.f32 0.020833334, %v434_v40  ;;  %v439_v42 = vsel %vm428_vm1, %v437_v39, 0.0 }
 0x1f2   : > { %v441_v43 = vmul.f32 %v439_v42, %v439_v42 }
 0x1f3   : > { %v438_v44 = vsub.f32 %v421_v33, %v436_v41 }
 0x1f4   : > { %443 = vadd.xlane.f32.xlu1 %v441_v43 }
 0x1f5   : > { %v440_v45 = vsel %vm428_vm1, %v438_v44, 0.0 }
 0x1f6   : > { %v442_v46 = vmul.f32 %v440_v45, %v440_v45 }
 0x1f8   : > { %445 = vadd.xlane.f32.xlu1 %v442_v46 }
 0x281   : > { %v444_v47 = vpop.xlane.xlu1 %443 }
 0x282   : > { %v447_v48 = vmul.f32 0.020833334, %v444_v47 }
 0x284   : > { %v449_v49 = vadd.f32 1e-05, %v447_v48 }
 0x285   : > { %v446_v50 = vpop.xlane.xlu1 %445 }
 0x286   : > { %714 = vrsqrt.f32 %v449_v49  ;;  %v448_v51 = vmul.f32 0.020833334, %v446_v50 }
 0x288   : > { %v450_v52 = vadd.f32 1e-05, %v448_v51 }
 0x28a   : > { %716 = vrsqrt.f32 %v450_v52 }
 0x290   : > { %v715_v53 = vpop.eup %714 }
 0x291   : > { %v453_v55 = vmul.f32 %v715_v53, %v439_v42 }
 0x293   : > { %v461_v57 = vmul.f32 %v592_v54, %v453_v55 }
 0x294   : > { %v717_v58 = vpop.eup %716 }
 0x295   : > { %v454_v59 = vmul.f32 %v717_v58, %v440_v45  ;;  %v469_v60 = vadd.f32 %v593_v56, %v461_v57 }
 0x297   : > { %v462_v61 = vmul.f32 %v592_v54, %v454_v59  ;;  %v471_v62 = vsel %vm428_vm1, %v469_v60, 0.0 }
 0x298   : > { %473 = vst [vmem:[%s1050_s22] sm:$0xff] %v471_v62 }
 0x299   : > { %v470_v63 = vadd.f32 %v593_v56, %v462_v61 }
 0x29b   : > { %v472_v0 = vsel %vm428_vm1, %v470_v63, 0.0 }
 0x29c   : > { %474 = vst [vmem:[%s1050_s22 + $0x8] sm:$0xff] %v472_v0 }
 0x29d   : > { %799 = shalt.err (!%p796_p2)
}
 0x29e   : > { %s800_s22 = scalar_lea.hbm %s1076_s18, 256  ;;  %s804_s29 = scalar_lea.hbm %s1132_s7, 512 }
 0x29f   : > { %p801_p4 = scmp.ne.s32.totalorder %s1076_s18, %s800_s22  ;;  %p805_p11 = scmp.lt.u32.totalorder %s1076_s18, %s1132_s7 }
 0x2a0   : > { %p806_p0 = scmp.lt.u32.totalorder %s804_s29, %s800_s22  ;;  %p808_p1 = scmp.lt.u32.totalorder %s800_s22, %s1076_s18 }
 0x2a1   : > { %p802_p5 = pnand %p801_p4, %p1149_p6 }
 0x2a2   : > { %p807_p3 = por %p806_p0, %p805_p11 }
 0x2a3   : > { %p803_p10 = pneg %p802_p5 }
 0x2a4   : > { %p809_p7 = por %p808_p1, %p807_p3 }
 0x2a6   : > { %p810_p8 = pnand %p809_p7, %p803_p10 }
 0x2a8   : > { %813 = shalt.err (!%p810_p8)
}
 0x2a9   : > { %s878_s11 = smov 128   ;;  %s879_s14 = smov 8  }
 0x2aa   : > { %637 = dma.vmem_to_hbm [thread:$0]  (%p1149_p6), %s1078_s13, 256, %s1076_s18, %s1084_s21, %s878_s11, %s878_s11, %s879_s14  }
 0x2ab PF: > { %p654_p9 = scmp.ge.s32.totalorder %s862_s9, 2  ;;  %s504_s19 = sand.u32 1, %s850_s0  }
 0x2ac   : > { %p1150_p12 = scmp.ne.s32.totalorder %s1138_s17, 0  ;;  %s505_s10 = scalar_lea.sflag [#allocation8], %s504_s19 }
 0x2ae   : > { %p647_p13 = pnand %p654_p9, %p1150_p12 }
 0x2b0   : > { %845 = dma.done.wait (!%p647_p13), %s505_s10, 256  }
 0x2b1   : > { %847 = vsyncadd (!%p647_p13), %s505_s10, 4294967040  ;;  %p26_p2 = scmp.ge.s32.totalorder %s951_s12, 4   ;;  %s1151_s0 = smov %s854_s1 }
 0x2b2   : > { %s1152_s1 = smov %s858_s8  ;;  %s1153_s8 = smov %s962_s15 }
 0x2b3   : > { %s1154_s9 = smov %s951_s12  ;;  %28 = sbr.rel (!%p26_p2) target bundleno = 20 (0x14), region = 109 }
 0x2ba   :  { %510 = vsyncpa [#allocation7], 1 }
 0x2bb   :  { %512 = vsyncpa [#allocation7 + $0x1], 1 }
 0x2bc   :  { %513 = vsyncpa [#allocation10], 1 }
 0x2bd   :  { %514 = vsyncpa [#allocation8], 1 }
 0x2be   :  { %516 = vsyncpa [#allocation8 + $0x1], 1 }

</bundles_post_ra>
